<compile_context>
chip_gen: v7x
topology: tpu7x:2x2x1
jax: 0.10.0
libtpu: 0.0.40
codegen_flags: <defaults>
</compile_context>

<pallas_src>
import jax
import jax.numpy as jnp
from jax import lax
from jax.experimental import pallas as pl
from jax.experimental.pallas import tpu as pltpu


def _round_up(x: int, m: int) -> int:
    return ((x + m - 1) // m) * m


def _matmul_bias_kernel(p_ref, w_ref, b_ref, o_ref):
    # One (TM, K) x (K, N) MXU GEMM with f32 accumulation + fused f32 bias add.
    acc = jnp.dot(p_ref[...], w_ref[...], preferred_element_type=jnp.float32)
    o_ref[...] = (acc + b_ref[...]).astype(o_ref.dtype)


def _im2col_nhwc(x_nchw, kernel, stride, padding):
    """Extract conv patches with K ordered (kh, kw, Cin).

    The only transpose is NCHW->NHWC on the *raw* input (much smaller than the
    expanded patches array); the patch tensor is assembled directly in
    (B, Ho, Wo, kh*kw, Cin) order so the final flatten is a free reshape.
    """
    B, Cin, H, W = x_nchw.shape
    kh, kw = kernel
    sh, sw = stride
    ph, pw = padding

    x_nhwc = jnp.transpose(x_nchw, (0, 2, 3, 1))              # (B, H, W, Cin)
    x_pad = jnp.pad(x_nhwc, ((0, 0), (ph, ph), (pw, pw), (0, 0)))
    Hp, Wp = H + 2 * ph, W + 2 * pw
    Ho = (Hp - kh) // sh + 1
    Wo = (Wp - kw) // sw + 1

    taps = []
    for di in range(kh):
        for dj in range(kw):
            sl = lax.slice(
                x_pad,
                (0, di, dj, 0),
                (B, di + sh * (Ho - 1) + 1, dj + sw * (Wo - 1) + 1, Cin),
                (1, sh, sw, 1),
            )                                                  # (B, Ho, Wo, Cin)
            taps.append(sl)
    patches = jnp.stack(taps, axis=3)                          # (B,Ho,Wo,kh*kw,Cin)
    patches = patches.reshape(B * Ho * Wo, kh * kw * Cin)
    return patches, Ho, Wo


def _choose_tm(M: int, tm_target: int) -> tuple[int, int]:
    """Pick (TM, Mp): prefer a multiple-of-8 divisor of M (no M pad / no
    post-slice) and >= 2 grid steps (v7x dual-TC), even step count if possible."""
    tm_target = max(256, 256 * (tm_target // 256))
    if M <= 512:
        return M, M                       # tiny problem: one full-M block
    cap = min(tm_target, _round_up((M + 1) // 2, 256))
    best_even = None
    best_any = None
    t = (cap // 8) * 8
    while t >= 8:
        if M % t == 0 and M // t >= 2:
            if best_any is None:
                best_any = t
            if (M // t) % 2 == 0:
                best_even = t
                break
        t -= 8
    tm = best_even if best_even is not None else best_any
    if tm is not None:
        return tm, M
    # No clean multiple-of-8 divisor: pad M to a multiple of a 256-aligned tile.
    return cap, _round_up(M, cap)


def patch_embed_forward(x_nchw, weight_oihw, bias, kernel, stride, padding,
                        *, tm_target=2048, compute_dtype=jnp.bfloat16,
                        out_dtype=None):
    """Equivalent of PatchEmbed.forward: Conv2d(x) then permute(0, 2, 3, 1)."""
    B, Cin, H, W = x_nchw.shape
    dim_out = weight_oihw.shape[0]
    kh, kw = kernel

    patches, Ho, Wo = _im2col_nhwc(x_nchw, kernel, stride, padding)   # (M, K)
    M, K = patches.shape
    N = dim_out

    # PyTorch weight (O, I, kh, kw) -> (kh, kw, Cin, O) -> (K, N), matching the
    # (kh, kw, Cin) K-ordering of the patches.  Weight is tiny; transpose free.
    w_mat = jnp.transpose(weight_oihw, (2, 3, 1, 0)).reshape(K, N)
    b_mat = bias.astype(jnp.float32).reshape(1, N)

    if compute_dtype is not None:
        # Stream operands in bf16 (native MXU input dtype); the cast fuses into
        # the im2col under jit so the HBM writeback is bf16 as well.
        patches = patches.astype(compute_dtype)
        w_mat = w_mat.astype(compute_dtype)

    TM, Mp = _choose_tm(M, tm_target)
    if Mp != M:
        patches = jnp.pad(patches, ((0, Mp - M), (0, 0)))

    out_dtype = x_nchw.dtype if out_dtype is None else out_dtype
    p_item = jnp.dtype(patches.dtype).itemsize
    o_item = jnp.dtype(out_dtype).itemsize

    cost = pl.CostEstimate(
        flops=2 * Mp * K * N,
        transcendentals=0,
        bytes_accessed=Mp * K * p_item + K * N * p_item + N * 4 + Mp * N * o_item,
    )

    # VMEM working set: double-buffered patch + output tiles, resident W/b
    # (lane-padded inside VMEM).  Only bump the limit past the v5e 16 MiB
    # scoped default when actually needed (large f32 tiles).
    vmem_need = (2 * TM * _round_up(K, 128) * p_item
                 + 2 * TM * _round_up(N, 128) * o_item
                 + _round_up(K, 8) * _round_up(N, 128) * p_item
                 + _round_up(N, 128) * 4)
    compiler_kwargs = dict(dimension_semantics=("parallel",))
    if vmem_need > 12 * 1024 * 1024:
        compiler_kwargs["vmem_limit_bytes"] = int(min(2 * vmem_need,
                                                      60 * 1024 * 1024))

    grid = (Mp // TM,)
    out_flat = pl.pallas_call(
        _matmul_bias_kernel,
        out_shape=jax.ShapeDtypeStruct((Mp, N), out_dtype),
        grid_spec=pltpu.PrefetchScalarGridSpec(
            num_scalar_prefetch=0,
            grid=grid,
            in_specs=[
                # Streamed patch tiles: full (unpadded) K, one contiguous DMA
                # slab per step.  (pipeline_mode=pl.Buffered(3) only if a
                # profile shows exposed DMA at step boundaries.)
                pl.BlockSpec((TM, K), lambda i: (i, 0)),
                # VMEM-resident weight / bias (constant index_map).
                pl.BlockSpec((K, N), lambda i: (0, 0)),
                pl.BlockSpec((1, N), lambda i: (0, 0)),
            ],
            # Full-N output block: no padded channels, no post-kernel repack.
            out_specs=pl.BlockSpec((TM, N), lambda i: (i, 0)),
        ),
        compiler_params=pltpu.CompilerParams(**compiler_kwargs),
        cost_estimate=cost,
    )(patches, w_mat, b_mat)

    if Mp != M:
        out_flat = out_flat[:M]
    # (M, N) -> NHWC (B, Ho, Wo, dim_out) == conv(x).permute(0, 2, 3, 1).
    return out_flat.reshape(B, Ho, Wo, dim_out)


if __name__ == "__main__":
    # Small, deterministic setup (hieradet defaults scaled down):
    #   dim_in=4, dim_out=32, kernel=(7,7), stride=(4,4), padding=(3,3)
    B, Cin, H, W = 2, 4, 16, 16
    dim_out = 32
    kernel = (7, 7)
    stride = (4, 4)
    padding = (3, 3)

    key = jax.random.PRNGKey(0)
    kx, kw_, kb = jax.random.split(key, 3)
    x = jax.random.normal(kx, (B, Cin, H, W), dtype=jnp.float32)
    weight = 0.05 * jax.random.normal(
        kw_, (dim_out, Cin, kernel[0], kernel[1]), dtype=jnp.float32
    )
    bias = 0.01 * jax.random.normal(kb, (dim_out,), dtype=jnp.float32)

    fwd = jax.jit(
        patch_embed_forward,
        static_argnames=("kernel", "stride", "padding", "tm_target",
                         "compute_dtype", "out_dtype"),
    )
    out = fwd(x, weight, bias, kernel=kernel, stride=stride, padding=padding)
    out = jax.block_until_ready(out)

    # Reference: XLA conv on the same bf16-rounded operands (kernel streams
    # bf16 with f32 accumulation), NCHW conv -> permute to NHWC.
    x_r = x.astype(jnp.bfloat16).astype(jnp.float32)
    w_r = weight.astype(jnp.bfloat16).astype(jnp.float32)
    ref = lax.conv_general_dilated(
        x_r, w_r, window_strides=stride,
        padding=[padding, padding],
        dimension_numbers=("NCHW", "OIHW", "NCHW"),
    ) + bias[None, :, None, None]
    ref = jnp.transpose(ref, (0, 2, 3, 1))
    assert out.shape == ref.shape, (out.shape, ref.shape)
    assert jnp.allclose(out, ref, atol=1e-3, rtol=1e-3), (
        float(jnp.max(jnp.abs(out - ref))))

    print("KERNEL_OK")
</pallas_src>

<mosaic_0001>
module attributes {stable_mosaic.version = 11 : i64} {
  func.func @_matmul_bias_kernel(%arg0: i32, %arg1: memref<32x196xbf16, #tpu.memory_space<vmem>>, %arg2: memref<196x32xbf16, #tpu.memory_space<vmem>>, %arg3: memref<1x32xf32, #tpu.memory_space<vmem>>, %arg4: memref<32x32xf32, #tpu.memory_space<vmem>>) attributes {dimension_semantics = [#tpu.dimension_semantics<parallel>], iteration_bounds = array<i64: 1>, scalar_prefetch = 0 : i64, scratch_operands = 0 : i64, tpu.core_type = #tpu.core_type<tc>, window_params = [{transform_indices = @transform_0, window_bounds = array<i64: 32, 196>}, {pipeline_mode = #tpu.pipeline_mode<synchronous>, transform_indices = @transform_1, window_bounds = array<i64: 196, 32>}, {pipeline_mode = #tpu.pipeline_mode<synchronous>, transform_indices = @transform_2, window_bounds = array<i64: 1, 32>}, {transform_indices = @transform_3, window_bounds = array<i64: 32, 32>}]} {
    %c0 = arith.constant 0 : index
    %c0_0 = arith.constant 0 : index
    %0 = vector.load %arg1[%c0, %c0_0] : memref<32x196xbf16, #tpu.memory_space<vmem>>, vector<32x196xbf16>
    %c0_1 = arith.constant 0 : index
    %c0_2 = arith.constant 0 : index
    %1 = vector.load %arg2[%c0_1, %c0_2] : memref<196x32xbf16, #tpu.memory_space<vmem>>, vector<196x32xbf16>
    %cst = arith.constant dense<0.000000e+00> : vector<32x32xf32>
    %2 = tpu.matmul %0, %1, %cst {dimension_numbers = #tpu.dot_dimension_numbers<[1], [0], [0], [1], [0, 0, 1, 1], [], []>} : vector<32x196xbf16>, vector<196x32xbf16>, vector<32x32xf32> -> vector<32x32xf32>
    %c0_3 = arith.constant 0 : index
    %c0_4 = arith.constant 0 : index
    %3 = vector.load %arg3[%c0_3, %c0_4] : memref<1x32xf32, #tpu.memory_space<vmem>>, vector<1x32xf32>
    %4 = vector.broadcast %3 : vector<1x32xf32> to vector<32x32xf32>
    %5 = arith.addf %2, %4 : vector<32x32xf32>
    %c0_5 = arith.constant 0 : index
    %c0_6 = arith.constant 0 : index
    %6 = vector.load %arg4[%c0_5, %c0_6] : memref<32x32xf32, #tpu.memory_space<vmem>>, vector<32x32xf32>
    tpu.vector_store %arg4[%c0_5, %c0_6], %5 {strides = array<i32>} : memref<32x32xf32, #tpu.memory_space<vmem>>, vector<32x32xf32>,
    return
  }
  func.func @transform_0(%arg0: i32) -> (i32, i32) {
    %c0_i32 = arith.constant 0 : i32
    %c0_i32_0 = arith.constant 0 : i32
    return %arg0, %c0_i32 : i32, i32
  }
  func.func @transform_1(%arg0: i32) -> (i32, i32) {
    %c0_i32 = arith.constant 0 : i32
    %c0_i32_0 = arith.constant 0 : i32
    %c0_i32_1 = arith.constant 0 : i32
    return %c0_i32, %c0_i32_0 : i32, i32
  }
  func.func @transform_2(%arg0: i32) -> (i32, i32) {
    %c0_i32 = arith.constant 0 : i32
    %c0_i32_0 = arith.constant 0 : i32
    %c0_i32_1 = arith.constant 0 : i32
    return %c0_i32, %c0_i32_0 : i32, i32
  }
  func.func @transform_3(%arg0: i32) -> (i32, i32) {
    %c0_i32 = arith.constant 0 : i32
    %c0_i32_0 = arith.constant 0 : i32
    return %arg0, %c0_i32 : i32, i32
  }
}

</mosaic_0001>

<bundles_post_ra>
// kernel: patch_embed_forward.1
= control target key start
LH: loop header
LB: loop body
LE: loop exit
PB: predicated region body
PF: predicated region fallthrough
CT: control target
= control target key end

     0   :  { %v319_v1 = vmov 0   ;;  %vm145_vm0 = vcmask 556032   ;;  %s439_s0 = inlined_call_operand.vmem [shape: bf16[32,196], index: 0, kind: input, shape index: {}]   ;;  %s440_s1 = inlined_call_operand.vmem [shape: bf16[196,32], index: 1, kind: input, shape index: {}]   ;;  %s441_s2 = inlined_call_operand.vmem [shape: f32[1,32], index: 2, kind: input, shape index: {}]   ;;  %s442_s3 = inlined_call_operand.hbm [shape: f32[32,32], index: 3, kind: output, shape index: {}]  }
   0x1   :  { %v276_v0 = vld [vmem:[%s440_s1] sm:$0xff]   ;;  %156 = vmatprep.subr.bf16.mxu0 %v319_v1  ;;  %246 = vmatprep.subr.bf16.mxu1 %v319_v1  ;;  %v277_v2 = vld [vmem:[%s440_s1 + $0x8] sm:$0xff]   ;;  %v278_v3 = vld [vmem:[%s440_s1 + $0x10] sm:$0xff]  }
   0x2   :  { %157 = vmatpush1.bf16.msra.mxu0 %v276_v0  ;;  %259 = vmatpush1.bf16.msra.mxu1 %v276_v0  ;;  %v279_v4 = vld [vmem:[%s440_s1 + $0x18] sm:$0xff]   ;;  %v291_v5 = vld [vmem:[%s439_s0 + $0x4] ss:$8 sps:$4 sm:$0xff]  }
   0x3   :  { %158 = vmatprep.subr.bf16.mxu0 %v319_v1  ;;  %247 = vmatprep.subr.bf16.mxu1 %v319_v1  ;;  %v280_v6 = vld [vmem:[%s440_s1 + $0x20] sm:$0xff]   ;;  %v294_v7 = vld [vmem:[%s439_s0 + $0x14] ss:$8 sps:$4 sm:$0xff]  }
   0x6   :  { %159 = vmatpush1.bf16.msra.mxu0 %v277_v2  ;;  %260 = vmatpush1.bf16.msra.mxu1 %v277_v2 }
   0x7   :  { %160 = vmatprep.subr.bf16.mxu0 %v319_v1  ;;  %248 = vmatprep.subr.bf16.mxu1 %v319_v1 }
   0xa   :  { %161 = vmatpush1.bf16.msra.mxu0 %v278_v3  ;;  %261 = vmatpush1.bf16.msra.mxu1 %v278_v3 }
   0xb   :  { %162 = vmatprep.subr.bf16.mxu0 %v319_v1  ;;  %249 = vmatprep.subr.bf16.mxu1 %v319_v1 }
   0xe   :  { %163 = vmatpush1.bf16.msra.mxu0 %v279_v4  ;;  %262 = vmatpush1.bf16.msra.mxu1 %v279_v4 }
   0xf   :  { %164 = vmatprep.subr.bf16.mxu0 %v319_v1  ;;  %250 = vmatprep.subr.bf16.mxu1 %v319_v1 }
  0x10   :  { %8 = vsyncpa [#allocation3], 0  ;;  %244 = vmatprep.mubr.msk.bf16.mxu0 %vm145_vm0, %v291_v5  ;;  %245 = vmatprep.mubr.msk.bf16.mxu1 %vm145_vm0, %v294_v7  ;;  %v281_v8 = vld [vmem:[%s440_s1 + $0x28] sm:$0xff]   ;;  %v282_v9 = vld [vmem:[%s440_s1 + $0x30] sm:$0xff]   ;;  %vm152_vm1 = vcmask 1041408   ;;  %s320_s20 = smov [#allocation2]  }
  0x11   :  { %v283_v10 = vld [vmem:[%s440_s1 + $0x38] sm:$0xff]   ;;  %v284_v11 = vld [vmem:[%s440_s1 + $0x40] sm:$0xff]   ;;  %v285_v12 = vld [vmem:[%s440_s1 + $0x48] sm:$0xff]   ;;  %s215_s21 = sshll.u32 %s320_s20, 4  ;;  %vm205_vm2 = vcmask 261120   ;;  %s216_s21 = int_to_ptr.vmem [resolvable:$true] %s215_s21 }
  0x12   :  { %165 = vmatpush1.bf16.msra.mxu0 %v280_v6  ;;  %263 = vmatpush1.bf16.msra.mxu1 %v280_v6  ;;  %v286_v13 = vld [vmem:[%s440_s1 + $0x50] sm:$0xff]   ;;  %v287_v14 = vld [vmem:[%s440_s1 + $0x58] sm:$0xff]   ;;  %v288_v15 = vld [vmem:[%s440_s1 + $0x60] ss:$0 sps:$4 sm:$0x33]   ;;  %p300_p1 = scmp.lt.s32.totalorder %s216_s21, %s216_s21 }
  0x13   :  { %166 = vmatprep.subr.bf16.mxu0 %v319_v1  ;;  %251 = vmatprep.subr.bf16.mxu1 %v319_v1  ;;  %v154_v16 = vsel %vm152_vm1, %v288_v15, 0  ;;  %v289_v17 = vld [vmem:[%s439_s0] ss:$8 sps:$4 sm:$0xff]   ;;  %v292_v18 = vld [vmem:[%s439_s0 + $0x10] ss:$8 sps:$4 sm:$0xff]   ;;  %s295_s0 = scalar_lea.vmem %s216_s21, 512 }
  0x14   :  { %v226_v19 = vld [vmem:[%s441_s2] ss:$0 sm:$0xff]  ;;  %p296_p0 = scmp.ne.s32.totalorder %s216_s21, %s295_s0  ;;  %p301_p2 = scmp.lt.s32.totalorder %s295_s0, %s295_s0 }
  0x16   :  { %167 = vmatpush1.bf16.msra.mxu0 %v281_v8  ;;  %264 = vmatpush1.bf16.msra.mxu1 %v281_v8  ;;  %p302_p3 = por %p301_p2, %p300_p1 }
  0x17   :  { %168 = vmatprep.subr.bf16.mxu0 %v319_v1  ;;  %252 = vmatprep.subr.bf16.mxu1 %v319_v1 }
  0x18   :  { %p303_p4 = pnand %p302_p3, %p296_p0 }
  0x1a   :  { %169 = vmatpush1.bf16.msra.mxu0 %v282_v9  ;;  %265 = vmatpush1.bf16.msra.mxu1 %v282_v9 }
  0x1b   :  { %170 = vmatprep.subr.bf16.mxu0 %v319_v1  ;;  %253 = vmatprep.subr.bf16.mxu1 %v319_v1 }
  0x1e   :  { %171 = vmatpush1.bf16.msra.mxu0 %v283_v10  ;;  %266 = vmatpush1.bf16.msra.mxu1 %v283_v10 }
  0x1f   :  { %172 = vmatprep.subr.bf16.mxu0 %v319_v1  ;;  %254 = vmatprep.subr.bf16.mxu1 %v319_v1 }
  0x22   :  { %173 = vmatpush1.bf16.msra.mxu0 %v284_v11  ;;  %267 = vmatpush1.bf16.msra.mxu1 %v284_v11 }
  0x23   :  { %174 = vmatprep.subr.bf16.mxu0 %v319_v1  ;;  %255 = vmatprep.subr.bf16.mxu1 %v319_v1 }
  0x26   :  { %175 = vmatpush1.bf16.msra.mxu0 %v285_v12  ;;  %268 = vmatpush1.bf16.msra.mxu1 %v285_v12 }
  0x27   :  { %176 = vmatprep.subr.bf16.mxu0 %v319_v1  ;;  %256 = vmatprep.subr.bf16.mxu1 %v319_v1 }
  0x2a   :  { %177 = vmatpush1.bf16.msra.mxu0 %v286_v13  ;;  %269 = vmatpush1.bf16.msra.mxu1 %v286_v13 }
  0x2b   :  { %178 = vmatprep.subr.bf16.mxu0 %v319_v1  ;;  %257 = vmatprep.subr.bf16.mxu1 %v319_v1 }
  0x2e   :  { %179 = vmatpush1.bf16.msra.mxu0 %v287_v14  ;;  %270 = vmatpush1.bf16.msra.mxu1 %v287_v14 }
  0x2f   :  { %180 = vmatprep.subr.bf16.mxu0 %v319_v1  ;;  %258 = vmatprep.subr.bf16.mxu1 %v319_v1 }
  0x32   :  { %181 = vmatpush1.bf16.msra.mxu0 %v154_v16  ;;  %271 = vmatpush1.bf16.msra.mxu1 %v154_v16 }
  0x35   :  { %189 = vmatmul.mubr.bf16.vlgmr.msra.gmra.mrb[0].mxu0 %v289_v17  ;;  %197 = vmatmul.mubr.bf16.vlgmr.msra.gmra.mrb[0].mxu1 %v292_v18 }
 0x108   :  { %v190_v20 = vpop.f32.mrb[0].mxu0  ;;  %v198_v21 = vpop.f32.mrb[0].mxu1 }
 0x109   :  { %v191_v22 = vadd.f32 %v226_v19, %v190_v20  ;;  %v199_v23 = vadd.f32 %v226_v19, %v198_v21  ;;  %v192_v24 = vpop.f32.mrb[1].mxu0  ;;  %v200_v25 = vpop.f32.mrb[1].mxu1 }
 0x10a   :  { %v193_v26 = vpop.f32.mrb[2].mxu0  ;;  %v201_v27 = vpop.f32.mrb[2].mxu1 }
 0x10b   :  { %206 = vst.msk [vmem:[#allocation2] sm:$0xff] %vm205_vm2, %v191_v22  ;;  %208 = vst.msk [vmem:[#allocation2 + $0x10] sm:$0xff] %vm205_vm2, %v199_v23  ;;  %v194_v28 = vadd.f32 %v226_v19, %v193_v26  ;;  %v202_v29 = vadd.f32 %v226_v19, %v201_v27  ;;  %v195_v30 = vpop.f32.mrb[3].mxu0  ;;  %v203_v31 = vpop.f32.mrb[3].mxu1 }
 0x10d   :  { %207 = vst.msk [vmem:[#allocation2 + $0x8] sm:$0xff] %vm205_vm2, %v194_v28  ;;  %209 = vst.msk [vmem:[#allocation2 + $0x18] sm:$0xff] %vm205_vm2, %v202_v29 }
 0x10e   :  { %306 = shalt.err (!%p303_p4)
}
 0x10f   :  { %s307_s23 = scalar_lea.hbm %s442_s3, 512 }
 0x110   :  { %p308_p5 = scmp.ne.s32.totalorder %s442_s3, %s307_s23  ;;  %p311_p6 = scmp.lt.u32.totalorder %s307_s23, %s442_s3 }
 0x112   :  { %p313_p7 = pnand %p311_p6, %p308_p5 }
 0x114   :  { %316 = shalt.err (!%p313_p7)
}
 0x115   :  { %s321_s28 = smov 128   ;;  %s322_s29 = smov 8  }
 0x116   :  { %221 = dma.vmem_to_hbm [thread:$0]  %s216_s21, 512, %s442_s3, [#allocation3], %s321_s28, %s321_s28, %s322_s29  }
 0x117   :  { %317 = dma.done.wait [#allocation3], 512  }
 0x118   :  { %318 = vsyncadd [#allocation3], 4294966784 }
 0x119   :  { %225 = vsyncpa [#allocation3], 1 }

</bundles_post_ra>
